<compile_context>
chip_gen: v7x
topology: tpu7x:2x2x1
jax: 0.10.0
libtpu: 0.0.40
codegen_flags: <defaults>
</compile_context>

<pallas_src>
import functools

import jax
import jax.numpy as jnp
import numpy as np
from jax.experimental import pallas as pl
from jax.experimental.pallas import tpu as pltpu


def _round_up(x, m):
    return ((x + m - 1) // m) * m


# ----------------------------- Pallas kernel ------------------------------- #
def _ssm_fused_kernel(cb_ref, x_ref, scale_ref, shift_ref, floor_ref, w_ref,
                      bias_ref, o_ref, acc_ref, *, inv_heads):
    """Fused (folded-BN affine + ReLU-floor) -> matmul -> (+bias, /H) kernel.

    Grid: (M tiles, N tiles, K tiles); K is the reduction ("arbitrary") axis.
    cb_ref is the scalar-prefetch column-block table (consumed by index_maps).
    """
    del cb_ref
    j = pl.program_id(1)
    k = pl.program_id(2)

    @pl.when(k == 0)
    def _():
        acc_ref[...] = jnp.zeros_like(acc_ref)

    # Per-K-tile constants are resident in VMEM; pick row k (dynamic index on
    # the leading axis).
    scale = scale_ref[k]      # (tk,)
    shift = shift_ref[k]      # (tk,)
    floor = floor_ref[k]      # (tk,)  0.0 for BN heads (ReLU), -f32max otherwise

    # Folded eval-mode BatchNorm affine + ReLU in one fused mul-add + max.
    a = jnp.maximum(x_ref[...] * scale + shift, floor)
    acc_ref[...] += jnp.dot(a, w_ref[...], preferred_element_type=jnp.float32)

    @pl.when(k == pl.num_programs(2) - 1)
    def _():
        o_ref[...] = ((acc_ref[...] + bias_ref[j]) * inv_heads).astype(o_ref.dtype)


# ------------------------------ glue / wrapper ----------------------------- #
def ssm_forward(features, params, num_heads, *, eps=1e-5):
    """Pallas implementation of SSM.forward.  features: (B, C) float32."""
    B, C = features.shape
    n = C // num_heads
    out_channels = params["b"][0].shape[0]

    # ---- tile selection: MXU-sized, adapted to small shapes ----
    tm = min(256, _round_up(B, 8))
    tk = min(512, max(128, _round_up(n, 128)))
    tn = min(512, _round_up(out_channels, 128))

    Mp = _round_up(B, tm)
    Np = _round_up(out_channels, tn)
    Cp = _round_up(C, tk)
    Nt = Np // tn

    neg_big = float(jnp.finfo(jnp.float32).min)

    # Per-head K segments, each padded to a tk multiple.  Padded columns are
    # neutralized by scale=shift=0 (=> activation 0) and zero weight rows.
    scale_rows, shift_rows, floor_rows, w_parts, col_blocks = [], [], [], [], []
    bias_sum = jnp.zeros((out_channels,), jnp.float32)
    for i in range(num_heads):
        kf = (i + 1) * n
        seg = _round_up(kf, tk)
        pad = seg - kf
        if i == num_heads - 1:
            # last head: raw features, no BN, no ReLU
            scale_seg = jnp.concatenate([jnp.ones((kf,), jnp.float32),
                                         jnp.zeros((pad,), jnp.float32)])
            shift_seg = jnp.zeros((seg,), jnp.float32)
            floor_seg = jnp.full((seg,), neg_big, jnp.float32)
        else:
            gamma, beta, mean, var = params["bn"][i]
            inv_std = jax.lax.rsqrt(var + eps)
            s = gamma * inv_std
            scale_seg = jnp.concatenate([s, jnp.zeros((pad,), jnp.float32)])
            shift_seg = jnp.concatenate([beta - mean * s,
                                         jnp.zeros((pad,), jnp.float32)])
            floor_seg = jnp.zeros((seg,), jnp.float32)   # ReLU floor
        scale_rows.append(scale_seg)
        shift_rows.append(shift_seg)
        floor_rows.append(floor_seg)
        w_parts.append(jnp.pad(params["w"][i].T, ((0, pad), (0, 0))))
        col_blocks.extend(range(seg // tk))   # column blocks of the ORIGINAL features
        bias_sum = bias_sum + params["b"][i]

    Kt = len(col_blocks)                                   # number of K tiles

    scale = jnp.concatenate(scale_rows).reshape(Kt, tk)
    shift = jnp.concatenate(shift_rows).reshape(Kt, tk)
    floor = jnp.concatenate(floor_rows).reshape(Kt, tk)
    w_cat = jnp.pad(jnp.concatenate(w_parts, axis=0),
                    ((0, 0), (0, Np - out_channels)))      # (Kt*tk, Np)
    bias = jnp.pad(bias_sum, (0, Np - out_channels)).reshape(Nt, tn)
    col_block = jnp.asarray(col_blocks, dtype=jnp.int32)   # (Kt,) scalar-prefetch

    # Features are read directly (no duplicated x_cat in HBM); pad to tiles.
    x_p = jnp.pad(features, ((0, Mp - B), (0, Cp - C)))

    grid = (Mp // tm, Np // tn, Kt)
    kernel = functools.partial(_ssm_fused_kernel, inv_heads=1.0 / num_heads)

    out_p = pl.pallas_call(
        kernel,
        out_shape=jax.ShapeDtypeStruct((Mp, Np), jnp.float32),
        grid_spec=pltpu.PrefetchScalarGridSpec(
            num_scalar_prefetch=1,
            grid=grid,
            in_specs=[
                # features: column block chosen via the prefetched table
                pl.BlockSpec((tm, tk), lambda i, j, k, cb: (i, cb[k])),
                # per-K-tile constants: resident (same block every grid step)
                pl.BlockSpec((Kt, tk), lambda i, j, k, cb: (0, 0)),   # scale
                pl.BlockSpec((Kt, tk), lambda i, j, k, cb: (0, 0)),   # shift
                pl.BlockSpec((Kt, tk), lambda i, j, k, cb: (0, 0)),   # floor
                # weights (concatenated, zero-padded per segment)
                pl.BlockSpec((tk, tn), lambda i, j, k, cb: (k, j)),
                # summed bias: resident
                pl.BlockSpec((Nt, tn), lambda i, j, k, cb: (0, 0)),
            ],
            out_specs=pl.BlockSpec((tm, tn), lambda i, j, k, cb: (i, j)),
            scratch_shapes=[pltpu.VMEM((tm, tn), jnp.float32)],
        ),
        compiler_params=pltpu.CompilerParams(
            dimension_semantics=("parallel", "parallel", "arbitrary"),
            vmem_limit_bytes=48 * 1024 * 1024),
    )(col_block, x_p, scale, shift, floor, w_cat, bias)

    return out_p[:B, :out_channels]


# ------------------------- pure-JAX reference ------------------------------ #
def ssm_reference(features, params, num_heads, eps=1e-5):
    B, C = features.shape
    n = C // num_heads
    result = None
    for i in range(num_heads):
        kf = (i + 1) * n
        x = features if i == num_heads - 1 else features[:, :kf]
        if i != num_heads - 1:
            gamma, beta, mean, var = params["bn"][i]
            x = (x - mean) * jax.lax.rsqrt(var + eps) * gamma + beta
            x = jnp.maximum(x, 0.0)
        y = x @ params["w"][i].T + params["b"][i]
        result = y if result is None else result + y
    return result / num_heads


# ------------------------------ param init --------------------------------- #
def init_params(key, num_channels, out_channels, num_heads):
    n = num_channels // num_heads
    params = {"w": [], "b": [], "bn": []}
    for i in range(num_heads):
        kf = (i + 1) * n
        key, k1, k2, k3, k4, k5, k6 = jax.random.split(key, 7)
        bound = 1.0 / float(np.sqrt(kf))
        params["w"].append(
            jax.random.uniform(k1, (out_channels, kf), jnp.float32, -bound, bound))
        params["b"].append(
            jax.random.uniform(k2, (out_channels,), jnp.float32, -bound, bound))
        if i != num_heads - 1:
            gamma = jax.random.uniform(k3, (kf,), jnp.float32, 0.5, 1.5)
            beta = jax.random.uniform(k4, (kf,), jnp.float32, -0.5, 0.5)
            mean = 0.1 * jax.random.normal(k5, (kf,), jnp.float32)
            var = jax.random.uniform(k6, (kf,), jnp.float32, 0.5, 1.5)
            params["bn"].append((gamma, beta, mean, var))
        else:
            params["bn"].append(None)
    return params


# --------------------------------- main ------------------------------------ #
if __name__ == "__main__":
    # Small shapes consistent with the module (scaled down from 2048/1000/4).
    batch, num_channels, out_channels, num_heads = 16, 64, 256, 4

    key = jax.random.PRNGKey(0)
    key, kx = jax.random.split(key)
    features = jax.random.normal(kx, (batch, num_channels), jnp.float32)
    params = init_params(key, num_channels, out_channels, num_heads)

    out = ssm_forward(features, params, num_heads)
    out = jax.block_until_ready(out)

    ref = ssm_reference(features, params, num_heads)
    np.testing.assert_allclose(np.asarray(out), np.asarray(ref),
                               rtol=1e-5, atol=1e-5)
    print("KERNEL_OK")
</pallas_src>

<mosaic_0001>
module attributes {stable_mosaic.version = 11 : i64} {
  func.func @_ssm_fused_kernel(%arg0: i32, %arg1: i32, %arg2: i32, %arg3: memref<4xi32, #tpu.memory_space<smem>>, %arg4: memref<16x128xf32, #tpu.memory_space<vmem>>, %arg5: memref<4x128xf32, #tpu.memory_space<vmem>>, %arg6: memref<4x128xf32, #tpu.memory_space<vmem>>, %arg7: memref<4x128xf32, #tpu.memory_space<vmem>>, %arg8: memref<128x256xf32, #tpu.memory_space<vmem>>, %arg9: memref<1x256xf32, #tpu.memory_space<vmem>>, %arg10: memref<16x256xf32, #tpu.memory_space<vmem>>, %arg11: memref<16x256xf32, #tpu.memory_space<vmem>>) attributes {dimension_semantics = [#tpu.dimension_semantics<parallel>, #tpu.dimension_semantics<parallel>, #tpu.dimension_semantics<arbitrary>], iteration_bounds = array<i64: 1, 1, 4>, scalar_prefetch = 1 : i64, scratch_operands = 1 : i64, tpu.core_type = #tpu.core_type<tc>, window_params = [{transform_indices = @transform_0, window_bounds = array<i64: 16, 128>}, {pipeline_mode = #tpu.pipeline_mode<synchronous>, transform_indices = @transform_1, window_bounds = array<i64: 4, 128>}, {pipeline_mode = #tpu.pipeline_mode<synchronous>, transform_indices = @transform_2, window_bounds = array<i64: 4, 128>}, {pipeline_mode = #tpu.pipeline_mode<synchronous>, transform_indices = @transform_3, window_bounds = array<i64: 4, 128>}, {transform_indices = @transform_4, window_bounds = array<i64: 128, 256>}, {pipeline_mode = #tpu.pipeline_mode<synchronous>, transform_indices = @transform_5, window_bounds = array<i64: 1, 256>}, {transform_indices = @transform_6, window_bounds = array<i64: 16, 256>}]} {
    %c0_i32 = arith.constant 0 : i32
    %0 = arith.cmpi eq, %arg2, %c0_i32 : i32
    %1 = arith.extui %0 : i1 to i32
    %c0_i32_0 = arith.constant 0 : i32
    %2 = arith.cmpi ne, %1, %c0_i32_0 : i32
    scf.if %2 {
      %cst_12 = arith.constant 0.000000e+00 : f32
      %30 = vector.broadcast %cst_12 : f32 to vector<16x256xf32>
      %c0_13 = arith.constant 0 : index
      %c0_14 = arith.constant 0 : index
      %31 = vector.load %arg11[%c0_13, %c0_14] : memref<16x256xf32, #tpu.memory_space<vmem>>, vector<16x256xf32>
      tpu.vector_store %arg11[%c0_13, %c0_14], %30 {strides = array<i32>} : memref<16x256xf32, #tpu.memory_space<vmem>>, vector<16x256xf32>,
    } else {
    }
    %3 = arith.index_cast %arg2 : i32 to index
    %c0 = arith.constant 0 : index
    %4 = vector.load %arg5[%3, %c0] : memref<4x128xf32, #tpu.memory_space<vmem>>, vector<1x128xf32>
    %5 = vector.shape_cast %4 : vector<1x128xf32> to vector<128xf32>
    %6 = arith.index_cast %arg2 : i32 to index
    %c0_1 = arith.constant 0 : index
    %7 = vector.load %arg6[%6, %c0_1] : memref<4x128xf32, #tpu.memory_space<vmem>>, vector<1x128xf32>
    %8 = vector.shape_cast %7 : vector<1x128xf32> to vector<128xf32>
    %9 = arith.index_cast %arg2 : i32 to index
    %c0_2 = arith.constant 0 : index
    %10 = vector.load %arg7[%9, %c0_2] : memref<4x128xf32, #tpu.memory_space<vmem>>, vector<1x128xf32>
    %11 = vector.shape_cast %10 : vector<1x128xf32> to vector<128xf32>
    %c0_3 = arith.constant 0 : index
    %c0_4 = arith.constant 0 : index
    %12 = vector.load %arg4[%c0_3, %c0_4] : memref<16x128xf32, #tpu.memory_space<vmem>>, vector<16x128xf32>
    %13 = vector.shape_cast %5 : vector<128xf32> to vector<1x128xf32>
    %14 = vector.broadcast %13 : vector<1x128xf32> to vector<16x128xf32>
    %15 = arith.mulf %12, %14 : vector<16x128xf32>
    %16 = vector.shape_cast %8 : vector<128xf32> to vector<1x128xf32>
    %17 = vector.broadcast %16 : vector<1x128xf32> to vector<16x128xf32>
    %18 = arith.addf %15, %17 : vector<16x128xf32>
    %19 = vector.shape_cast %11 : vector<128xf32> to vector<1x128xf32>
    %20 = vector.broadcast %19 : vector<1x128xf32> to vector<16x128xf32>
    %21 = arith.maximumf %18, %20 : vector<16x128xf32>
    %c0_5 = arith.constant 0 : index
    %c0_6 = arith.constant 0 : index
    %22 = vector.load %arg11[%c0_5, %c0_6] : memref<16x256xf32, #tpu.memory_space<vmem>>, vector<16x256xf32>
    %c0_7 = arith.constant 0 : index
    %c0_8 = arith.constant 0 : index
    %23 = vector.load %arg8[%c0_7, %c0_8] : memref<128x256xf32, #tpu.memory_space<vmem>>, vector<128x256xf32>
    %cst = arith.constant dense<0.000000e+00> : vector<16x256xf32>
    %24 = tpu.matmul %21, %23, %cst {dimension_numbers = #tpu.dot_dimension_numbers<[1], [0], [0], [1], [0, 0, 1, 1], [], []>} : vector<16x128xf32>, vector<128x256xf32>, vector<16x256xf32> -> vector<16x256xf32>
    %25 = arith.addf %22, %24 : vector<16x256xf32>
    %c0_9 = arith.constant 0 : index
    %c0_10 = arith.constant 0 : index
    %26 = vector.load %arg11[%c0_9, %c0_10] : memref<16x256xf32, #tpu.memory_space<vmem>>, vector<16x256xf32>
    tpu.vector_store %arg11[%c0_9, %c0_10], %25 {strides = array<i32>} : memref<16x256xf32, #tpu.memory_space<vmem>>, vector<16x256xf32>,
    %c3_i32 = arith.constant 3 : i32
    %27 = arith.cmpi eq, %arg2, %c3_i32 : i32
    %28 = arith.extui %27 : i1 to i32
    %c0_i32_11 = arith.constant 0 : i32
    %29 = arith.cmpi ne, %28, %c0_i32_11 : i32
    scf.if %29 {
      %c0_12 = arith.constant 0 : index
      %c0_13 = arith.constant 0 : index
      %30 = vector.load %arg11[%c0_12, %c0_13] : memref<16x256xf32, #tpu.memory_space<vmem>>, vector<16x256xf32>
      %31 = arith.index_cast %arg1 : i32 to index
      %c0_14 = arith.constant 0 : index
      %32 = vector.load %arg9[%31, %c0_14] : memref<1x256xf32, #tpu.memory_space<vmem>>, vector<1x256xf32>
      %33 = vector.shape_cast %32 : vector<1x256xf32> to vector<256xf32>
      %34 = vector.shape_cast %33 : vector<256xf32> to vector<1x256xf32>
      %35 = vector.broadcast %34 : vector<1x256xf32> to vector<16x256xf32>
      %36 = arith.addf %30, %35 : vector<16x256xf32>
      %cst_15 = arith.constant 2.500000e-01 : f32
      %37 = vector.broadcast %cst_15 : f32 to vector<16x256xf32>
      %38 = arith.mulf %36, %37 : vector<16x256xf32>
      %c0_16 = arith.constant 0 : index
      %c0_17 = arith.constant 0 : index
      %39 = vector.load %arg10[%c0_16, %c0_17] : memref<16x256xf32, #tpu.memory_space<vmem>>, vector<16x256xf32>
      tpu.vector_store %arg10[%c0_16, %c0_17], %38 {strides = array<i32>} : memref<16x256xf32, #tpu.memory_space<vmem>>, vector<16x256xf32>,
    } else {
    }
    return
  }
  func.func @transform_0(%arg0: i32, %arg1: i32, %arg2: i32, %arg3: memref<4xi32, #tpu.memory_space<smem>>) -> (i32, i32) {
    %0 = arith.index_cast %arg2 : i32 to index
    %1 = memref.load %arg3[%0] : memref<4xi32, #tpu.memory_space<smem>>
    %c0_i32 = arith.constant 0 : i32
    return %arg0, %1 : i32, i32
  }
  func.func @transform_1(%arg0: i32, %arg1: i32, %arg2: i32, %arg3: memref<4xi32, #tpu.memory_space<smem>>) -> (i32, i32) {
    %c0_i32 = arith.constant 0 : i32
    %c0_i32_0 = arith.constant 0 : i32
    %c0_i32_1 = arith.constant 0 : i32
    return %c0_i32, %c0_i32_0 : i32, i32
  }
  func.func @transform_2(%arg0: i32, %arg1: i32, %arg2: i32, %arg3: memref<4xi32, #tpu.memory_space<smem>>) -> (i32, i32) {
    %c0_i32 = arith.constant 0 : i32
    %c0_i32_0 = arith.constant 0 : i32
    %c0_i32_1 = arith.constant 0 : i32
    return %c0_i32, %c0_i32_0 : i32, i32
  }
  func.func @transform_3(%arg0: i32, %arg1: i32, %arg2: i32, %arg3: memref<4xi32, #tpu.memory_space<smem>>) -> (i32, i32) {
    %c0_i32 = arith.constant 0 : i32
    %c0_i32_0 = arith.constant 0 : i32
    %c0_i32_1 = arith.constant 0 : i32
    return %c0_i32, %c0_i32_0 : i32, i32
  }
  func.func @transform_4(%arg0: i32, %arg1: i32, %arg2: i32, %arg3: memref<4xi32, #tpu.memory_space<smem>>) -> (i32, i32) {
    %c0_i32 = arith.constant 0 : i32
    return %arg2, %arg1 : i32, i32
  }
  func.func @transform_5(%arg0: i32, %arg1: i32, %arg2: i32, %arg3: memref<4xi32, #tpu.memory_space<smem>>) -> (i32, i32) {
    %c0_i32 = arith.constant 0 : i32
    %c0_i32_0 = arith.constant 0 : i32
    %c0_i32_1 = arith.constant 0 : i32
    return %c0_i32, %c0_i32_0 : i32, i32
  }
  func.func @transform_6(%arg0: i32, %arg1: i32, %arg2: i32, %arg3: memref<4xi32, #tpu.memory_space<smem>>) -> (i32, i32) {
    %c0_i32 = arith.constant 0 : i32
    return %arg0, %arg1 : i32, i32
  }
}

</mosaic_0001>

<bundles_post_ra>
// kernel: tpu_custom_call.1
= control target key start
LH: loop header
LB: loop body
LE: loop exit
PB: predicated region body
PF: predicated region fallthrough
CT: control target
= control target key end

     0   :  { %s1403_s0 = inlined_call_operand.hbm [shape: s32[4], index: 0, kind: input, shape index: {}]   ;;  %s1404_s1 = inlined_call_operand.hbm [shape: f32[16,128], index: 1, kind: input, shape index: {}]   ;;  %s1405_s2 = inlined_call_operand.vmem [shape: f32[4,128], index: 2, kind: input, shape index: {}]   ;;  %s1406_s3 = inlined_call_operand.vmem [shape: f32[4,128], index: 3, kind: input, shape index: {}]   ;;  %s1407_s4 = inlined_call_operand.vmem [shape: f32[4,128], index: 4, kind: input, shape index: {}]   ;;  %s1408_s5 = inlined_call_operand.hbm [shape: f32[512,256], index: 5, kind: input, shape index: {}]   ;;  %s1409_s6 = inlined_call_operand.vmem [shape: f32[1,256], index: 6, kind: input, shape index: {}]   ;;  %s1410_s7 = inlined_call_operand.hbm [shape: f32[16,256], index: 7, kind: output, shape index: {}]  }
   0x1   :  { %1418 = sst [smem:[#allocation20_spill]] %s1404_s1  ;;  %s825_s26 = scalar_lea.hbm %s1403_s0, 16 }
   0x2   :  { %p826_p0 = scmp.ne.s32.totalorder %s1403_s0, %s825_s26  ;;  %p829_p1 = scmp.lt.u32.totalorder %s825_s26, %s1403_s0 }
   0x4   :  { %p831_p2 = pnand %p829_p1, %p826_p0 }
   0x6   :  { %834 = shalt.err (!%p831_p2)  }
   0x7   :  { %s1007_s8 = smov [#allocation4]  }
   0x8   :  { %13 = dma.hbm_to_smem %s1403_s0, 16, %s1007_s8, [#allocation3] }
   0x9   :  { %957 = dma.done.wait [#allocation3], 16 }
   0xa   :  { %958 = vsyncadd [#allocation3], 4294967280 }
   0xb   :  { %15 = sfence }
   0xc   :  { %16 = vsyncpa [#allocation6], 0 }
   0xd   :  { %18 = vsyncpa [#allocation6 + $0x1], 0 }
   0xe   :  { %19 = vsyncpa [#allocation9], 0 }
   0xf   :  { %21 = vsyncpa [#allocation9 + $0x1], 0 }
  0x10   :  { %22 = vsyncpa [#allocation7], 0  ;;  %s1071_s11 = smov 0   ;;  %s1073_s12 = smov 0  }
  0x11   :  { %s1075_s13 = smov 0   ;;  %s1077_s14 = smov 0  }
  0x12   :  { %s1079_s15 = smov 0   ;;  %s1081_s16 = smov 0  }
  0x13   :  { %s1083_s0 = smov 0   ;;  %s1085_s17 = smov 0  }
  0x14   :  { %s1087_s18 = smov 0  }
  0x15 LB: > { %1419 = sst [smem:[#allocation17_spill]] %s993_s16  ;;  %s1411_s19 = sadd.s32 4294967295, %s1005_s18   ;;  %s1005_s18 = sphi %s1087_s18, %s28_s18   ;;  %s1001_s17 = sphi %s1085_s17, %s1448_s17   ;;  %s997_s0 = sphi %s1083_s0, %s1447_s0   ;;  %s993_s16 = sphi %s1081_s16, %s1440_s16   ;;  %s989_s15 = sphi %s1079_s15, %s1446_s15   ;;  %s985_s14 = sphi %s1077_s14, %s1445_s14   ;;  %s981_s13 = sphi %s1075_s13, %s1444_s13   ;;  %s977_s12 = sphi %s1073_s12, %s1443_s12   ;;  %s973_s11 = sphi %s1071_s11, %s1442_s11  }
  0x16   : > { %s40_s20 = sadd.s32 1, %s1001_s17  ;;  %s51_s21 = sld [smem:[#allocation4 + %s1001_s17]] }
  0x17   : > { %p41_p3 = scmp.ge.s32.totalorder %s40_s20, 4  ;;  %s58_s22 = sadd.s32 1, %s993_s16 }
  0x18   : > { %p65_p4 = scmp.ne.s32.totalorder %s993_s16, %s989_s15  ;;  %p1414_p5 = scmp.eq.s32.totalorder %s1005_s18, 0 }
  0x19   : > { %s1450_s20 = smov (%p41_p3, %s40_s20), 0  ;;  %p71_p6 = scmp.ne.s32.totalorder %s989_s15, %s985_s14 }
  0x1a   : > { %1420 = sst [smem:[#allocation18_spill]] %s1450_s20  ;;  %p1127_p7 = scmp.eq.s32.totalorder %s1411_s19, 0 }
  0x1b   : > { %s52_s23 = sld [smem:[#allocation4 + %s1450_s20]]  ;;  %p1133_p8 = por %p1414_p5, %p65_p4 }
  0x1c   : > { %s1421_s24 = scalar_select %p1127_p7, 1, 0 }
  0x1d   : > { %p1139_p9 = por %p1127_p7, %p71_p6  ;;  %p1413_p10 = scmp.lt.s32.totalorder %s1005_s18, 4 }
  0x1e   : > { %s247_s27 = sand.u32 1, %s993_s16   ;;  %p659_p13 = scmp.ge.s32.totalorder %s1005_s18, 1 }
  0x1f   : > { %s1423_s26 = scalar_select %p1139_p9, 1, 0 }
  0x20   : > { %s653_s28 = sshll.u32 %s247_s27, 4  ;;  %p1149_p11 = pnand %p1413_p10, %p1133_p8 }
  0x21   : > { %s54_s30 = ssub.s32 %s51_s21, %s52_s23  ;;  %s251_s8 = scalar_lea.vmem [#allocation5], %s653_s28 }
  0x22   : > { %s260_s9 = sshll.u32 %s251_s8, 4  ;;  %p56_p12 = scmp.eq.s32.totalorder %s54_s30, 0  ;;  %s1153_s9 = int_to_ptr.vmem [resolvable:$true] %s260_s9 }
  0x23   : > { %s721_s10 = scalar_select %p1133_p8, [#allocation4], [#allocation11] }
  0x24   : > { %s1158_s14 = scalar_select %p56_p12, %s993_s16, %s58_s22  }
  0x25   : > { %s722_s19 = scalar_select %p1133_p8, %s1001_s17, 0 }
  0x26   : > { %1425 = sst [smem:[#allocation19_spill]] %s1158_s14  ;;  %s1452_s10 = smov (!%p1413_p10, %s721_s10), [#allocation12] }
  0x27   : > { %s1454_s19 = smov (!%p1413_p10, %s722_s19), 0  ;;  %p292_p0 = scmp.lt.s32.totalorder %s1005_s18, 5 }
  0x28   : > { %s252_s21 = sld [smem:[%s1452_s10 + %s1454_s19]]  ;;  %s144_s28 = ssub.s32 %s1001_s17, %s1450_s20 }
  0x29   : > { %p1169_p1 = pnand %p659_p13, %p292_p0  ;;  %s149_s30 = sadd.s32 1, %s981_s13 }
  0x2a   : > { %p1176_p2 = scmp.eq.s32.totalorder %s144_s28, 0  ;;  %s1428_s1 = sld [smem:[#allocation20_spill]] }
  0x2b   : > { %s1426_s23 = scalar_select %p1169_p1, 1, 0 }
  0x2c   : > { %s1187_s19 = scalar_lea.sflag [#allocation6], %s247_s27  ;;  %p837_p6 = pneg %p1149_p11 }
  0x2e   : > { %s654_s8 = sshll.u32 %s252_s21, 7 }
  0x30   : > { %s1183_s16 = scalar_lea.hbm %s1428_s1, %s654_s8  ;;  %s840_s14 = scalar_lea.hbm %s1428_s1, 256 }
  0x31   : > { %s835_s10 = scalar_lea.hbm %s1183_s16, 256  ;;  %p841_p13 = scmp.lt.u32.totalorder %s1183_s16, %s1428_s1 }
  0x32   : > { %p836_p4 = scmp.ne.s32.totalorder %s1183_s16, %s835_s10  ;;  %p842_p0 = scmp.lt.u32.totalorder %s840_s14, %s835_s10 }
  0x33   : > { %p844_p3 = scmp.lt.u32.totalorder %s835_s10, %s1183_s16 }
  0x34   : > { %p838_p8 = pnand %p837_p6, %p836_p4  ;;  %p843_p10 = por %p842_p0, %p841_p13 }
  0x36   : > { %p839_p12 = pneg %p838_p8  ;;  %p845_p5 = por %p844_p3, %p843_p10 }
  0x38   : > { %p846_p9 = pnand %p845_p5, %p839_p12 }
  0x3a   : > { %849 = shalt.err (!%p846_p9)
}
  0x3b   : > { %s850_s27 = scalar_lea.vmem %s1153_s9, 256  ;;  %s1008_s21 = smov [#allocation5]  }
  0x3c   : > { %p851_p4 = scmp.ne.s32.totalorder %s1153_s9, %s850_s27  ;;  %s855_s28 = sshll.u32 %s1008_s21, 4  ;;  %s856_s28 = int_to_ptr.vmem [resolvable:$false] %s855_s28 }
  0x3d   : > { %s857_s8 = scalar_lea.vmem %s856_s28, 512  ;;  %p858_p7 = scmp.lt.s32.totalorder %s1153_s9, %s856_s28 }
  0x3e   : > { %p853_p8 = pnand %p851_p4, %p837_p6  ;;  %p859_p13 = scmp.lt.s32.totalorder %s857_s8, %s850_s27 }
  0x40   : > { %p854_p1 = pneg %p853_p8  ;;  %p860_p0 = por %p859_p13, %p858_p7 }
  0x42   : > { %p861_p10 = pnand %p860_p0, %p854_p1 }
  0x44   : > { %864 = shalt.err (!%p861_p10)
}
  0x45   : > { %s1009_s10 = smov 128   ;;  %s1010_s14 = smov 8  }
  0x46   : > { %736 = dma.hbm_to_vmem [thread:$0]  (!%p1149_p11), %s1183_s16, 256, %s1153_s9, %s1187_s19, %s1009_s10, %s1009_s10, %s1010_s14  }
  0x47   : > { %s1220_s25 = scalar_select %p1176_p2, %s981_s13, %s149_s30  }
  0x48   : > { %p1429_p5 = scmp.eq.s32.totalorder %s1005_s18, 0  ;;  %p1430_p7 = scmp.ne.s32.totalorder %s981_s13, %s977_s12 }
  0x49   : > { %p162_p1 = scmp.ne.s32.totalorder %s977_s12, %s973_s11  ;;  %s270_s27 = sand.u32 1, %s981_s13  }
  0x4a   : > { %p158_p9 = por %p1430_p7, %p1429_p5  ;;  %s672_s21 = sshll.u32 %s1001_s17, 12 }
  0x4b   : > { %p1431_p3 = scmp.ne.s32.totalorder %s1421_s24, 0  ;;  %s655_s8 = sshll.u32 %s270_s27, 8 }
  0x4c   : > { %s1240_s16 = scalar_lea.hbm %s1408_s5, %s672_s21  ;;  %p1433_p11 = scmp.lt.s32.totalorder %s1005_s18, 4 }
  0x4d   : > { %p1233_p6 = por %p162_p1, %p1431_p3  ;;  %s274_s24 = scalar_lea.vmem [#allocation8], %s655_s8 }
  0x4e   : > { %p1244_p2 = pnand %p1433_p11, %p158_p9  ;;  %s284_s29 = sshll.u32 %s274_s24, 4  ;;  %s1248_s29 = int_to_ptr.vmem [resolvable:$true] %s284_s29 }
  0x4f   : > { %s1250_s9 = scalar_lea.sflag [#allocation9], %s270_s27  ;;  %s865_s1 = scalar_lea.hbm %s1240_s16, 4096 }
  0x50   : > { %p866_p12 = scmp.ne.s32.totalorder %s1240_s16, %s865_s1  ;;  %p867_p4 = pneg %p1244_p2 }
  0x51   : > { %s870_s22 = scalar_lea.hbm %s1408_s5, 16384  ;;  %p871_p0 = scmp.lt.u32.totalorder %s1240_s16, %s1408_s5 }
  0x52   : > { %p868_p8 = pnand %p867_p4, %p866_p12  ;;  %p872_p10 = scmp.lt.u32.totalorder %s870_s22, %s865_s1 }
  0x53   : > { %p874_p7 = scmp.lt.u32.totalorder %s865_s1, %s1240_s16 }
  0x54   : > { %p869_p13 = pneg %p868_p8  ;;  %p873_p5 = por %p872_p10, %p871_p0 }
  0x56   : > { %p875_p9 = por %p874_p7, %p873_p5 }
  0x58   : > { %p876_p1 = pnand %p875_p9, %p869_p13 }
  0x5a   : > { %879 = shalt.err (!%p876_p1)
}
  0x5b   : > { %s880_s14 = scalar_lea.vmem %s1248_s29, 4096  ;;  %s1011_s27 = smov [#allocation8]  }
  0x5c   : > { %p881_p3 = scmp.ne.s32.totalorder %s1248_s29, %s880_s14  ;;  %s885_s21 = sshll.u32 %s1011_s27, 4  ;;  %s886_s21 = int_to_ptr.vmem [resolvable:$false] %s885_s21 }
  0x5d   : > { %s887_s8 = scalar_lea.vmem %s886_s21, 8192  ;;  %p888_p8 = scmp.lt.s32.totalorder %s1248_s29, %s886_s21 }
  0x5e   : > { %p883_p11 = pnand %p881_p3, %p867_p4  ;;  %p889_p0 = scmp.lt.s32.totalorder %s887_s8, %s880_s14 }
  0x60   : > { %p884_p12 = pneg %p883_p11  ;;  %p890_p10 = por %p889_p0, %p888_p8 }
  0x62   : > { %p891_p5 = pnand %p890_p10, %p884_p12 }
  0x64   : > { %894 = shalt.err (!%p891_p5)
}
  0x65   : > { %s1012_s24 = smov 256   ;;  %s1013_s1 = smov 16  }
  0x66   : > { %739 = dma.hbm_to_vmem [thread:$0]  (!%p1244_p2), %s1240_s16, 4096, %s1248_s29, %s1250_s9, %s1012_s24, %s1012_s24, %s1013_s1  }
  0x67   : > { %p1435_p4 = scmp.ne.s32.totalorder %s1426_s23, 0 }
  0x68   : > { %s298_s20 = sand.u32 (!%p1435_p4), 1, %s989_s15   ;;  %p1436_p13 = scmp.ne.s32.totalorder (!%p1435_p4), %s1423_s26, 0 }
  0x69   : > { %296 = sbr.rel (%p1435_p4) target bundleno = 415 (0x19f), region = 44  ;;  %s1281_s30 = sshll.u32 (!%p1435_p4), %s298_s20, 4 }
  0x6a   : > { %s299_s22 = scalar_lea.sflag (!%p1435_p4), [#allocation6], %s298_s20  ;;  %s302_s19 = scalar_lea.vmem (!%p1435_p4), [#allocation5], %s1281_s30 }
  0x70   : > { %960 = dma.done.wait (%p1436_p13), %s299_s22, 256  }
  0x71   : > { %962 = vsyncadd (%p1436_p13), %s299_s22, 4294967040  ;;  %s307_s11 = sand.u32 1, %s977_s12  }
  0x72   : > { %s661_s16 = sshll.u32 %s307_s11, 8  ;;  %s308_s29 = scalar_lea.sflag [#allocation9], %s307_s11 }
  0x73   : > { %s1289_s23 = scalar_lea.vmem [#allocation8], %s661_s16 }
  0x74   : > { %964 = dma.done.wait (%p1233_p6), %s308_s29, 4096  }
  0x75   : > { %966 = vsyncadd (%p1233_p6), %s308_s29, 4294963200  ;;  %p662_p2 = scmp.ne.s32.totalorder %s997_s0, 0 }
  0x76   : > { %v1014_v0 = vmov (!%p662_p2), 0.0  }
  0x77   : > { %349 = sbr.rel (%p662_p2) target bundleno = 126 (0x7e), region = 56  ;;  %350 = vst [vmem:[#allocation2] sm:$0xff] (!%p662_p2), %v1014_v0  ;;  %351 = vst [vmem:[#allocation2 + $0x8] sm:$0xff] (!%p662_p2), %v1014_v0 }
  0x78   : > { %352 = vst [vmem:[#allocation2 + $0x10] sm:$0xff] (!%p662_p2), %v1014_v0  ;;  %353 = vst [vmem:[#allocation2 + $0x18] sm:$0xff] (!%p662_p2), %v1014_v0 }
  0x7e PF: > { %v385_v1 = vld [vmem:[%s1289_s23 + $0x8] sm:$0xff]  ;;  %v387_v2 = vld [vmem:[%s1289_s23 + $0x18] sm:$0xff]  ;;  %v384_v3 = vld [vmem:[%s1289_s23] sm:$0xff]  ;;  %v1015_v8 = vmov 0.0   ;;  %s354_s9 = scalar_lea.vmem %s1405_s2, %s997_s0  ;;  %s356_s27 = scalar_lea.vmem %s1406_s3, %s997_s0 }
  0x7f   : > { %v673_v4 = vpack.c.bf16 %v387_v2, %v385_v1  ;;  %v386_v5 = vld [vmem:[%s1289_s23 + $0x10] sm:$0xff]  ;;  %v389_v6 = vld [vmem:[%s1289_s23 + $0x28] sm:$0xff]  ;;  %v391_v7 = vld [vmem:[%s1289_s23 + $0x38] sm:$0xff]  ;;  %480 = vmatprep.mubr.f32.mxu0 %v1015_v8  ;;  %486 = vmatprep.mubr.f32.mxu1 %v1015_v8  ;;  %s358_s24 = scalar_lea.vmem %s1407_s4, %s997_s0  ;;  %p666_p6 = scmp.ne.s32.totalorder %s997_s0, 3 }
  0x80   : > { %v675_v9 = vpack.c.bf16 %v386_v5, %v384_v3  ;;  %v677_v10 = vpack.c.bf16 %v391_v7, %v389_v6  ;;  %v388_v11 = vld [vmem:[%s1289_s23 + $0x20] sm:$0xff]  ;;  %v390_v12 = vld [vmem:[%s1289_s23 + $0x30] sm:$0xff]  ;;  %v393_v13 = vld [vmem:[%s1289_s23 + $0x48] sm:$0xff] }
  0x81   : > { %674 = vmatprep.subr.bf16.mxu0 %v673_v4  ;;  %705 = vmatprep.subr.bf16.mxu1 %v673_v4  ;;  %v395_v14 = vld [vmem:[%s1289_s23 + $0x58] sm:$0xff]  ;;  %v679_v15 = vpack.c.bf16 %v390_v12, %v388_v11  ;;  %v392_v17 = vld [vmem:[%s1289_s23 + $0x40] sm:$0xff]  ;;  %v394_v18 = vld [vmem:[%s1289_s23 + $0x50] sm:$0xff] }
  0x82   : > { %676 = vmatpush1.bf16.msra.mxu0 %v675_v9  ;;  %713 = vmatpush1.bf16.msra.mxu1 %v675_v9  ;;  %v681_v16 = vpack.c.bf16 %v395_v14, %v393_v13  ;;  %v397_v19 = vld [vmem:[%s1289_s23 + $0x68] sm:$0xff]  ;;  %v399_v20 = vld [vmem:[%s1289_s23 + $0x78] sm:$0xff]  ;;  %v683_v21 = vpack.c.bf16 %v394_v18, %v392_v17  ;;  %v396_v23 = vld [vmem:[%s1289_s23 + $0x60] sm:$0xff]  ;;  %v513_v9 = vlaneseq (!%p666_p6) }
  0x83   : > { %678 = vmatprep.subr.bf16.mxu0 %v677_v10  ;;  %706 = vmatprep.subr.bf16.mxu1 %v677_v10  ;;  %v685_v22 = vpack.c.bf16 %v399_v20, %v397_v19  ;;  %v398_v24 = vld [vmem:[%s1289_s23 + $0x70] sm:$0xff]  ;;  %v401_v25 = vld [vmem:[%s1289_s23 + $0x88] sm:$0xff]  ;;  %v403_v26 = vld [vmem:[%s1289_s23 + $0x98] sm:$0xff] }
  0x84   : > { %v687_v27 = vpack.c.bf16 %v398_v24, %v396_v23  ;;  %v689_v28 = vpack.c.bf16 %v403_v26, %v401_v25  ;;  %v400_v29 = vld [vmem:[%s1289_s23 + $0x80] sm:$0xff]  ;;  %v402_v30 = vld [vmem:[%s1289_s23 + $0x90] sm:$0xff]  ;;  %v405_v31 = vld [vmem:[%s1289_s23 + $0xa8] sm:$0xff]  ;;  %v514_v10 = vshrl.u32 (!%p666_p6), %v513_v9, 7 }
  0x85   : > { %v407_v32 = vld [vmem:[%s1289_s23 + $0xb8] sm:$0xff]  ;;  %v691_v33 = vpack.c.bf16 %v402_v30, %v400_v29  ;;  %v404_v35 = vld [vmem:[%s1289_s23 + $0xa0] sm:$0xff]  ;;  %v406_v36 = vld [vmem:[%s1289_s23 + $0xb0] sm:$0xff] }
  0x86   : > { %680 = vmatpush1.bf16.msra.mxu0 %v679_v15  ;;  %714 = vmatpush1.bf16.msra.mxu1 %v679_v15  ;;  %v693_v34 = vpack.c.bf16 %v407_v32, %v405_v31  ;;  %v409_v37 = vld [vmem:[%s1289_s23 + $0xc8] sm:$0xff]  ;;  %v411_v38 = vld [vmem:[%s1289_s23 + $0xd8] sm:$0xff]  ;;  %v695_v39 = vpack.c.bf16 %v406_v36, %v404_v35  ;;  %v663_v40 = vld [vmem:[%s354_s9] ss:$0 sm:$0xff]  ;;  %v515_v13 = vsub.s32 (!%p666_p6), 0, %v514_v10  ;;  %v519_v14 = vsub.s32 (!%p666_p6), 1, %v514_v10 }
  0x87   : > { %682 = vmatprep.subr.bf16.mxu0 %v681_v16  ;;  %707 = vmatprep.subr.bf16.mxu1 %v681_v16  ;;  %v360_v41 = vld [vmem:[%s302_s19] sm:$0xff]  ;;  %v361_v42 = vld [vmem:[%s302_s19 + $0x8] sm:$0xff]  ;;  %v697_v43 = vpack.c.bf16 %v411_v38, %v409_v37 }
  0x88   : > { %v408_v44 = vld [vmem:[%s1289_s23 + $0xc0] sm:$0xff]  ;;  %v410_v45 = vld [vmem:[%s1289_s23 + $0xd0] sm:$0xff]  ;;  %v413_v46 = vld [vmem:[%s1289_s23 + $0xe8] sm:$0xff]  ;;  %v366_v48 = vmul.f32 %v663_v40, %v360_v41  ;;  %v367_v49 = vmul.f32 %v663_v40, %v361_v42 }
  0x89   : > { %v415_v47 = vld [vmem:[%s1289_s23 + $0xf8] sm:$0xff]  ;;  %v699_v50 = vpack.c.bf16 %v410_v45, %v408_v44  ;;  %v664_v51 = vld [vmem:[%s356_s27] ss:$0 sm:$0xff]  ;;  %v414_v54 = vld [vmem:[%s1289_s23 + $0xf0] sm:$0xff] }
  0x8a   : > { %684 = vmatpush1.bf16.msra.mxu0 %v683_v21  ;;  %715 = vmatpush1.bf16.msra.mxu1 %v683_v21  ;;  %v701_v52 = vpack.c.bf16 %v415_v47, %v413_v46  ;;  %v412_v53 = vld [vmem:[%s1289_s23 + $0xe0] sm:$0xff]  ;;  %v372_v55 = vadd.f32 %v664_v51, %v366_v48  ;;  %v373_v56 = vadd.f32 %v664_v51, %v367_v49  ;;  %v382_v62 = vld [vmem:[#allocation2 + $0x10] sm:$0xff]  ;;  %v381_v63 = vld [vmem:[#allocation2 + $0x8] sm:$0xff] }
  0x8b   : > { %686 = vmatprep.subr.bf16.mxu0 %v685_v22  ;;  %708 = vmatprep.subr.bf16.mxu1 %v685_v22  ;;  %v703_v57 = vpack.c.bf16 %v414_v54, %v412_v53  ;;  %v665_v58 = vld [vmem:[%s358_s24] ss:$0 sm:$0xff]  ;;  %v383_v0 = vld [vmem:[#allocation2 + $0x18] sm:$0xff] }
  0x8c   : > { %v378_v59 = vmax.f32 %v372_v55, %v665_v58  ;;  %v379_v60 = vmax.f32 %v373_v56, %v665_v58  ;;  %v380_v61 = vld [vmem:[#allocation2] sm:$0xff] }
  0x8d   : > { %v511_v11 = vld [vmem:[%s1409_s6] sm:$0x3] (!%p666_p6) }
  0x8e   : > { %688 = vmatpush1.bf16.msra.mxu0 %v687_v27  ;;  %716 = vmatpush1.bf16.msra.mxu1 %v687_v27  ;;  %v516_v18 = vrot.slane (!%p666_p6), %v511_v11, %v515_v13  ;;  %v520_v19 = vrot.slane (!%p666_p6), %v511_v11, %v519_v14 }
  0x8f   : > { %690 = vmatprep.subr.bf16.mxu0 %v689_v28  ;;  %709 = vmatprep.subr.bf16.mxu1 %v689_v28 }
  0x92   : > { %692 = vmatpush1.bf16.msra.mxu0 %v691_v33  ;;  %717 = vmatpush1.bf16.msra.mxu1 %v691_v33 }
  0x93   : > { %694 = vmatprep.subr.bf16.mxu0 %v693_v34  ;;  %710 = vmatprep.subr.bf16.mxu1 %v693_v34 }
  0x96   : > { %696 = vmatpush1.bf16.msra.mxu0 %v695_v39  ;;  %718 = vmatpush1.bf16.msra.mxu1 %v695_v39 }
  0x97   : > { %698 = vmatprep.subr.bf16.mxu0 %v697_v43  ;;  %711 = vmatprep.subr.bf16.mxu1 %v697_v43 }
  0x9a   : > { %700 = vmatpush1.bf16.msra.mxu0 %v699_v50  ;;  %719 = vmatpush1.bf16.msra.mxu1 %v699_v50 }
  0x9b   : > { %702 = vmatprep.subr.bf16.mxu0 %v701_v52  ;;  %712 = vmatprep.subr.bf16.mxu1 %v701_v52 }
  0x9e   : > { %704 = vmatpush1.bf16.msra.mxu0 %v703_v57  ;;  %720 = vmatpush1.bf16.msra.mxu1 %v703_v57 }
  0xa1   : > { %481 = vmatmul.mubr.f32.vlgmr.msra.gmra.mrb[0].mxu0 %v378_v59  ;;  %487 = vmatmul.mubr.f32.vlgmr.msra.gmra.mrb[0].mxu1 %v379_v60 }
 0x172   : > { %504 = sbr.rel (%p666_p6) target bundleno = 389 (0x185), region = 60 }
 0x174   : > { %v482_v1 = vpop.f32.mrb[0].mxu0  ;;  %v488_v2 = vpop.f32.mrb[0].mxu1 }
 0x175   : > { %v493_v3 = vadd.f32 %v482_v1, %v380_v61  ;;  %v495_v4 = vadd.f32 %v488_v2, %v382_v62  ;;  %v484_v5 = vpop.f32.mrb[1].mxu0  ;;  %v490_v6 = vpop.f32.mrb[1].mxu1 }
 0x176   : > { %v494_v7 = vadd.f32 %v484_v5, %v381_v63  ;;  %v496_v8 = vadd.f32 %v490_v6, %v383_v0 }
 0x177   : > { %497 = vst [vmem:[#allocation2] sm:$0xff] %v493_v3  ;;  %499 = vst [vmem:[#allocation2 + $0x10] sm:$0xff] %v495_v4 }
 0x178   : > { %498 = vst [vmem:[#allocation2 + $0x8] sm:$0xff] %v494_v7  ;;  %500 = vst [vmem:[#allocation2 + $0x18] sm:$0xff] %v496_v8 }
 0x17e   : > { %v505_v12 = vld [vmem:[#allocation2] sm:$0xff]  ;;  %v507_v16 = vld [vmem:[#allocation2 + $0x10] sm:$0xff] }
 0x17f   : > { %v506_v15 = vld [vmem:[#allocation2 + $0x8] sm:$0xff]  ;;  %v508_v17 = vld [vmem:[#allocation2 + $0x18] sm:$0xff]  ;;  %v523_v20 = vadd.f32 %v516_v18, %v505_v12  ;;  %v525_v22 = vadd.f32 %v516_v18, %v507_v16 }
 0x180   : > { %v524_v21 = vadd.f32 %v520_v19, %v506_v15  ;;  %v526_v23 = vadd.f32 %v520_v19, %v508_v17 }
 0x181   : > { %v527_v24 = vmul.f32 0.25, %v523_v20  ;;  %v529_v26 = vmul.f32 0.25, %v525_v22 }
 0x182   : > { %v528_v25 = vmul.f32 0.25, %v524_v21  ;;  %v530_v27 = vmul.f32 0.25, %v526_v23 }
 0x183   : > { %531 = vst [vmem:[#allocation10] sm:$0xff] %v527_v24  ;;  %533 = vst [vmem:[#allocation10 + $0x10] sm:$0xff] %v529_v26 }
 0x184   : > { %532 = vst [vmem:[#allocation10 + $0x8] sm:$0xff] %v528_v25  ;;  %534 = vst [vmem:[#allocation10 + $0x18] sm:$0xff] %v530_v27 }
 0x185 PF: > { %s1437_s0 = sadd.s32 4294967295, %s1005_s18   ;;  %s1016_s22 = smov [#allocation10]  }
 0x186   : > { %p1350_p7 = scmp.eq.s32.totalorder %s1437_s0, 3  ;;  %s547_s19 = sshll.u32 %s1016_s22, 4  ;;  %s548_s19 = int_to_ptr.vmem [resolvable:$true] %s547_s19 }
 0x187   : > { %s895_s11 = scalar_lea.vmem %s548_s19, 512  ;;  %p902_p11 = scmp.lt.s32.totalorder %s548_s19, %s548_s19 }
 0x188   : > { %p896_p9 = scmp.ne.s32.totalorder %s548_s19, %s895_s11  ;;  %p903_p12 = scmp.lt.s32.totalorder %s895_s11, %s895_s11 }
 0x18a   : > { %p897_p1 = pnand %p896_p9, %p1350_p7  ;;  %p904_p8 = por %p903_p12, %p902_p11 }
 0x18c   : > { %p898_p3 = pneg %p897_p1 }
 0x18e   : > { %p905_p0 = pnand %p904_p8, %p898_p3 }
 0x190   : > { %908 = shalt.err (!%p905_p0)
}
 0x191   : > { %s909_s23 = scalar_lea.hbm %s1410_s7, 512 }
 0x192   : > { %p910_p10 = scmp.ne.s32.totalorder %s1410_s7, %s909_s23  ;;  %p915_p13 = scmp.lt.u32.totalorder %s909_s23, %s1410_s7 }
 0x194   : > { %p911_p5 = pnand %p910_p10, %p1350_p7 }
 0x196   : > { %p912_p4 = pneg %p911_p5 }
 0x198   : > { %p917_p2 = pnand %p915_p13, %p912_p4 }
 0x19a   : > { %920 = shalt.err (!%p917_p2)
}
 0x19b   : > { %s1017_s14 = smov 256   ;;  %s1018_s27 = smov 16  }
 0x19c   : > { %728 = dma.vmem_to_hbm [thread:$0]  (%p1350_p7), %s548_s19, 512, %s1410_s7, [#allocation7], %s1017_s14, %s1017_s14, %s1018_s27  }
 0x19d   : > { %968 = dma.done.wait (%p1350_p7), [#allocation7], 512  }
 0x19e   : > { %970 = vsyncadd (%p1350_p7), [#allocation7], 4294966784 }
 0x19f PF: > { %s28_s18 = sadd.s32 1, %s1005_s18   ;;  %s1439_s24 = sld [smem:[#allocation17_spill]] }
 0x1a0   : > { %p25_p6 = scmp.ge.s32.totalorder %s28_s18, 6   ;;  %s1440_s16 = sld [smem:[#allocation19_spill]] }
 0x1a1   : > { %s1441_s1 = sld [smem:[#allocation18_spill]]  ;;  %s1442_s11 = smov %s977_s12 }
 0x1a2   : > { %s1443_s12 = smov %s981_s13  ;;  %s1444_s13 = smov %s1220_s25 }
 0x1a3   : > { %s1445_s14 = smov %s989_s15  ;;  %s1447_s0 = smov %s1001_s17 }
 0x1a4   :  { %27 = sbr.rel (!%p25_p6) target bundleno = 21 (0x15), region = 107 }
 0x1a5   : > { %s1446_s15 = smov %s1439_s24 }
 0x1a7   : > { %s1448_s17 = smov %s1441_s1 }
 0x1ab   :  { %563 = vsyncpa [#allocation6], 1 }
 0x1ac   :  { %565 = vsyncpa [#allocation6 + $0x1], 1 }
 0x1ad   :  { %566 = vsyncpa [#allocation9], 1 }
 0x1ae   :  { %568 = vsyncpa [#allocation9 + $0x1], 1 }
 0x1af   :  { %569 = vsyncpa [#allocation7], 1 }
 0x1b0   :  { %571 = vsyncpa [#allocation7 + $0x1], 1 }

</bundles_post_ra>
